<compile_context>
chip_gen: v7x
topology: tpu7x:2x2x1
jax: 0.10.0
libtpu: 0.0.40
codegen_flags: <defaults>
</compile_context>

<pallas_src>
import functools

import jax
import jax.numpy as jnp
from jax.experimental import pallas as pl
from jax.experimental.pallas import tpu as pltpu


def _layer_norm(v, gamma, beta, eps=1e-5):
    # v: (T, E) f32; gamma/beta: (1, E) f32. Biased variance, matching nn.LayerNorm.
    mu = jnp.mean(v, axis=-1, keepdims=True)
    var = jnp.mean((v - mu) ** 2, axis=-1, keepdims=True)
    return (v - mu) * jax.lax.rsqrt(var + eps) * gamma + beta


# ----------------------------- Kernel 1: LN1 + fused QKV -----------------------------

def ln_qkv_kernel(x_ref, ln1g_ref, ln1b_ref, wqkv_ref, xn_ref, qkv_ref):
    xn = _layer_norm(x_ref[0], ln1g_ref[...], ln1b_ref[...])          # (tq, E) f32
    xn_ref[0] = xn
    qkv_ref[0] = jnp.dot(xn.astype(jnp.bfloat16), wqkv_ref[...],
                         preferred_element_type=jnp.float32).astype(jnp.bfloat16)


# ------------------- Kernel 2: flash attention + out-proj + MLP ----------------------

def attn_mlp_kernel(q_ref, k_ref, v_ref, xn_ref,
                    wp_ref, bp_ref, ln2g_ref, ln2b_ref,
                    w1_ref, b1_ref, w2_ref, b2_ref,
                    o_ref,
                    m_sc, l_sc, acc_sc, attn_sc,
                    *, mlp_chunk):
    f32 = jnp.float32
    bf16 = jnp.bfloat16

    n_heads, tq, head_size = q_ref.shape[1], q_ref.shape[2], q_ref.shape[3]
    tk = k_ref.shape[2]
    qi = pl.program_id(1)
    ki = pl.program_id(2)
    n_kv = pl.num_programs(2)
    q_start = qi * tq
    k_start = ki * tk

    @pl.when(ki == 0)
    def _init():
        m_sc[...] = jnp.full_like(m_sc, -jnp.inf)
        l_sc[...] = jnp.zeros_like(l_sc)
        acc_sc[...] = jnp.zeros_like(acc_sc)

    # Skip KV blocks that lie strictly above the causal diagonal (fully masked).
    @pl.when(k_start <= q_start + (tq - 1))
    def _compute():
        q = q_ref[0]                                   # (H, tq, hs) bf16, pre-scaled
        k = k_ref[0]                                   # (H, tk, hs) bf16
        v = v_ref[0]                                   # (H, tk, hs) bf16

        # Head-batched QK^T: contract head_size, batch over heads -> (H, tq, tk) f32.
        s = jax.lax.dot_general(q, k, (((2,), (2,)), ((0,), (0,))),
                                preferred_element_type=f32)

        row = q_start + jax.lax.broadcasted_iota(jnp.int32, (tq, tk), 0)
        col = k_start + jax.lax.broadcasted_iota(jnp.int32, (tq, tk), 1)
        s = jnp.where((col <= row)[None], s, -1e30)    # masked_fill(-inf) equivalent

        m_prev = m_sc[...]                                         # (H, tq, 1)
        m_new = jnp.maximum(m_prev, jnp.max(s, axis=-1, keepdims=True))
        alpha = jnp.exp(m_prev - m_new)
        p = jnp.exp(s - m_new)                                     # (H, tq, tk) f32
        l_sc[...] = alpha * l_sc[...] + jnp.sum(p, axis=-1, keepdims=True)
        pv = jax.lax.dot_general(p.astype(bf16), v, (((2,), (1,)), ((0,), (0,))),
                                 preferred_element_type=f32)       # (H, tq, hs)
        acc_sc[...] = alpha * acc_sc[...] + pv
        m_sc[...] = m_new

    @pl.when(ki == n_kv - 1)
    def _finalize():
        inv_l = pl.reciprocal(l_sc[...], approx=True)              # (H, tq, 1)
        out_h = acc_sc[...] * inv_l                                # (H, tq, hs) f32
        # Pack heads into a token-major (tq, E) bf16 slab so the output projection
        # is ONE full-width (tq,E)@(E,E) MXU matmul instead of n_heads K=hs matmuls.
        for h in range(n_heads):
            attn_sc[:, h * head_size:(h + 1) * head_size] = out_h[h].astype(bf16)
        proj = jnp.dot(attn_sc[...], wp_ref[...],
                       preferred_element_type=f32)                 # (tq, E)

        # Matches the PyTorch module: x is reassigned to LN1(x), so BOTH residual
        # adds use the *normed* activation xn.
        xn = xn_ref[0]                                             # (tq, E) f32
        x2 = xn + proj + bp_ref[...]

        x2n = _layer_norm(x2, ln2g_ref[...], ln2b_ref[...])
        x2n_b = x2n.astype(bf16)
        hidden = w1_ref.shape[1]
        mlp = jnp.zeros_like(x2)
        for c0 in range(0, hidden, mlp_chunk):          # static loop, exact chunks
            c1 = c0 + mlp_chunk
            h1 = jnp.dot(x2n_b, w1_ref[:, c0:c1], preferred_element_type=f32)
            h1 = jnp.maximum(h1 + b1_ref[:, c0:c1], 0.0).astype(bf16)
            mlp = mlp + jnp.dot(h1, w2_ref[c0:c1, :], preferred_element_type=f32)

        o_ref[0] = (x2 + mlp + b2_ref[...]).astype(o_ref.dtype)


# ---------------------------------- host wrapper --------------------------------------

def _pick_seq_tile(T):
    for t in (256, 128, 64, 32, 16, 8):
        if T % t == 0:
            return t
    return T                      # ragged T: one full-sequence tile


def _pick_mlp_chunk(hidden):
    for c in (512, 256, 128):
        if hidden % c == 0:
            return c
    return hidden                 # tiny/ragged hidden dim: single exact chunk


def _vmem_limit_bytes():
    # Hardware query only; the fallback never changes kernel structure or the
    # number/size of buffers, only the scoped-VMEM ceiling.
    try:
        cap = getattr(pltpu.get_tpu_info(), "vmem_capacity_bytes", None)
    except Exception:
        cap = None
    if not cap:
        cap = 64 * 1024 * 1024    # conservative: smallest physical VMEM (v7x)
    return int(cap * 3 // 4)      # ~48 MiB on v7x, ~96 MiB on v5e/v6e


def block_forward(x, params, *, n_heads):
    B, T, E = x.shape
    assert E % n_heads == 0
    hs = E // n_heads
    bf16 = jnp.bfloat16

    tq = _pick_seq_tile(T)
    tk = tq
    n_q = T // tq
    n_kv = T // tk
    mlp_chunk = _pick_mlp_chunk(4 * E)
    vmem_limit = _vmem_limit_bytes()

    # Host-side weight prep: fold the softmax scale into the Q weights, fuse QKV,
    # pre-transpose so kernels compute `act @ W`, cast matmul weights to bf16.
    wq_scaled = params["wq"] * (hs ** -0.5)
    wqkv_t = jnp.concatenate([wq_scaled, params["wk"], params["wv"]],
                             axis=0).T.astype(bf16)                 # (E, 3E)
    wp_t = params["wp"].T.astype(bf16)                              # (E, E)
    w1_t = params["w1"].T.astype(bf16)                              # (E, 4E)
    w2_t = params["w2"].T.astype(bf16)                              # (4E, E)

    # ---- Kernel 1: LN1 + fused QKV projection ----
    cost1 = pl.CostEstimate(
        flops=6 * B * T * E * E,
        transcendentals=B * T,
        bytes_accessed=2 * B * T * E * 4 + B * T * 3 * E * 2 + 3 * E * E * 2)
    xn, qkv = pl.pallas_call(
        ln_qkv_kernel,
        out_shape=(jax.ShapeDtypeStruct((B, T, E), jnp.float32),
                   jax.ShapeDtypeStruct((B, T, 3 * E), bf16)),
        grid_spec=pltpu.PrefetchScalarGridSpec(
            num_scalar_prefetch=0,
            grid=(B, n_q),
            in_specs=[pl.BlockSpec((1, tq, E), lambda b, i: (b, i, 0)),
                      pl.BlockSpec((1, E), lambda b, i: (0, 0)),
                      pl.BlockSpec((1, E), lambda b, i: (0, 0)),
                      pl.BlockSpec((E, 3 * E), lambda b, i: (0, 0))],
            out_specs=[pl.BlockSpec((1, tq, E), lambda b, i: (b, i, 0)),
                       pl.BlockSpec((1, tq, 3 * E), lambda b, i: (b, i, 0))]),
        compiler_params=pltpu.CompilerParams(
            dimension_semantics=("parallel", "parallel"),
            vmem_limit_bytes=vmem_limit),
        cost_estimate=cost1,
    )(x, params["ln1_g"], params["ln1_b"], wqkv_t)

    # Layout plumbing (XLA, outside the kernels): split QKV and present each head's
    # q/k/v as contiguous (B, H, T, hs) slabs so kernel 2 never relayouts per step.
    def to_heads(a):
        return a.reshape(B, T, n_heads, hs).transpose(0, 2, 1, 3)
    q_h = to_heads(qkv[..., :E])
    k_h = to_heads(qkv[..., E:2 * E])
    v_h = to_heads(qkv[..., 2 * E:])

    # ---- Kernel 2: flash-style causal attention + out-proj + residuals + MLP ----
    cost2 = pl.CostEstimate(
        flops=2 * B * T * T * E + 18 * B * T * E * E,
        transcendentals=B * n_heads * T * T // 2 + 2 * B * T,
        bytes_accessed=(3 * B * T * E * 2 + 2 * B * T * E * 4 + 9 * E * E * 2))
    kernel2 = functools.partial(attn_mlp_kernel, mlp_chunk=mlp_chunk)
    out = pl.pallas_call(
        kernel2,
        out_shape=jax.ShapeDtypeStruct((B, T, E), jnp.float32),
        grid_spec=pltpu.PrefetchScalarGridSpec(
            num_scalar_prefetch=0,
            grid=(B, n_q, n_kv),
            in_specs=[
                pl.BlockSpec((1, n_heads, tq, hs), lambda b, qi, ki: (b, 0, qi, 0)),
                pl.BlockSpec((1, n_heads, tk, hs), lambda b, qi, ki: (b, 0, ki, 0)),
                pl.BlockSpec((1, n_heads, tk, hs), lambda b, qi, ki: (b, 0, ki, 0)),
                pl.BlockSpec((1, tq, E), lambda b, qi, ki: (b, qi, 0)),
                pl.BlockSpec((E, E), lambda b, qi, ki: (0, 0)),       # wp_t
                pl.BlockSpec((1, E), lambda b, qi, ki: (0, 0)),       # bp
                pl.BlockSpec((1, E), lambda b, qi, ki: (0, 0)),       # ln2 gamma
                pl.BlockSpec((1, E), lambda b, qi, ki: (0, 0)),       # ln2 beta
                pl.BlockSpec((E, 4 * E), lambda b, qi, ki: (0, 0)),   # w1_t
                pl.BlockSpec((1, 4 * E), lambda b, qi, ki: (0, 0)),   # b1
                pl.BlockSpec((4 * E, E), lambda b, qi, ki: (0, 0)),   # w2_t
                pl.BlockSpec((1, E), lambda b, qi, ki: (0, 0)),       # b2
            ],
            out_specs=pl.BlockSpec((1, tq, E), lambda b, qi, ki: (b, qi, 0)),
            scratch_shapes=[
                pltpu.VMEM((n_heads, tq, 1), jnp.float32),    # running max m
                pltpu.VMEM((n_heads, tq, 1), jnp.float32),    # running denom l
                pltpu.VMEM((n_heads, tq, hs), jnp.float32),   # running numerator
                pltpu.VMEM((tq, E), bf16),                    # packed head outputs
            ]),
        compiler_params=pltpu.CompilerParams(
            dimension_semantics=("parallel", "parallel", "arbitrary"),
            vmem_limit_bytes=vmem_limit),
        cost_estimate=cost2,
    )(q_h, k_h, v_h, xn, wp_t, params["bp"], params["ln2_g"], params["ln2_b"],
      w1_t, params["b1"], w2_t, params["b2"])
    return out


# ------------------------------- params / reference -----------------------------------

def init_params(key, max_context_length, embedding_size, n_heads):
    E = embedding_size
    ks = jax.random.split(key, 8)
    s_e = 1.0 / jnp.sqrt(E)
    s_h = 1.0 / jnp.sqrt(4 * E)
    # Per-head QKV weights (bias=False) stacked along the out dimension -> (E, E).
    return {
        "ln1_g": jnp.ones((1, E), jnp.float32),
        "ln1_b": jnp.zeros((1, E), jnp.float32),
        "wq": jax.random.normal(ks[0], (E, E), jnp.float32) * s_e,
        "wk": jax.random.normal(ks[1], (E, E), jnp.float32) * s_e,
        "wv": jax.random.normal(ks[2], (E, E), jnp.float32) * s_e,
        "wp": jax.random.normal(ks[3], (E, E), jnp.float32) * s_e,
        "bp": jax.random.normal(ks[4], (1, E), jnp.float32) * s_e,
        "ln2_g": jnp.ones((1, E), jnp.float32),
        "ln2_b": jnp.zeros((1, E), jnp.float32),
        "w1": jax.random.normal(ks[5], (4 * E, E), jnp.float32) * s_e,
        "b1": jnp.zeros((1, 4 * E), jnp.float32),
        "w2": jax.random.normal(ks[6], (E, 4 * E), jnp.float32) * s_h,
        "b2": jnp.zeros((1, E), jnp.float32),
    }


def block_reference(x, params, *, n_heads, matmul_dtype=jnp.float32):
    # Pure-JAX reference mirroring the PyTorch forward (dropout = identity).
    # matmul_dtype lets the reference emulate the kernel's bf16 matmul inputs
    # (f32 accumulation) so the comparison checks structure, not rounding.
    E = x.shape[-1]
    hs = E // n_heads

    def mm(a, b):
        return jnp.dot(a.astype(matmul_dtype), b.astype(matmul_dtype),
                       preferred_element_type=jnp.float32)

    def ln(v, g, b):
        mu = jnp.mean(v, axis=-1, keepdims=True)
        var = jnp.mean((v - mu) ** 2, axis=-1, keepdims=True)
        return (v - mu) / jnp.sqrt(var + 1e-5) * g[0] + b[0]

    xn = ln(x, params["ln1_g"], params["ln1_b"])
    q = mm(xn, params["wq"].T)
    k = mm(xn, params["wk"].T)
    v = mm(xn, params["wv"].T)
    T = x.shape[1]
    mask = jnp.tril(jnp.ones((T, T), bool))
    outs = []
    for h in range(n_heads):
        sl = slice(h * hs, (h + 1) * hs)
        s = jnp.einsum("bqd,bkd->bqk", q[..., sl].astype(matmul_dtype),
                       k[..., sl].astype(matmul_dtype),
                       preferred_element_type=jnp.float32) * hs ** -0.5
        s = jnp.where(mask, s, -jnp.inf)
        p = jax.nn.softmax(s, axis=-1)
        outs.append(jnp.einsum("bqk,bkd->bqd", p.astype(matmul_dtype),
                               v[..., sl].astype(matmul_dtype),
                               preferred_element_type=jnp.float32))
    cat = jnp.concatenate(outs, axis=-1)
    x2 = xn + mm(cat, params["wp"].T) + params["bp"][0]
    x2n = ln(x2, params["ln2_g"], params["ln2_b"])
    h1 = jnp.maximum(mm(x2n, params["w1"].T) + params["b1"][0], 0.0)
    return x2 + mm(h1, params["w2"].T) + params["b2"][0]


if __name__ == "__main__":
    B, T, E, H = 2, 8, 32, 4      # batch, seq (=max_context_length), embed, heads
    key = jax.random.PRNGKey(0)
    kx, kp = jax.random.split(key)
    x = jax.random.normal(kx, (B, T, E), jnp.float32)
    params = init_params(kp, max_context_length=T, embedding_size=E, n_heads=H)

    out = block_forward(x, params, n_heads=H)
    out = jax.block_until_ready(out)

    ref = block_reference(x, params, n_heads=H, matmul_dtype=jnp.bfloat16)
    assert out.shape == (B, T, E)
    assert bool(jnp.allclose(out, ref, atol=2e-2, rtol=2e-2)), "mismatch vs JAX reference"

    print("KERNEL_OK")
</pallas_src>

<mosaic_0001>
module attributes {stable_mosaic.version = 11 : i64} {
  func.func @ln_qkv_kernel(%arg0: i32, %arg1: i32, %arg2: memref<1x8x32xf32, #tpu.memory_space<vmem>>, %arg3: memref<1x32xf32, #tpu.memory_space<vmem>>, %arg4: memref<1x32xf32, #tpu.memory_space<vmem>>, %arg5: memref<32x96xbf16, #tpu.memory_space<vmem>>, %arg6: memref<1x8x32xf32, #tpu.memory_space<vmem>>, %arg7: memref<1x8x96xbf16, #tpu.memory_space<vmem>>) attributes {dimension_semantics = [#tpu.dimension_semantics<parallel>, #tpu.dimension_semantics<parallel>], iteration_bounds = array<i64: 2, 1>, scalar_prefetch = 0 : i64, scratch_operands = 0 : i64, tpu.core_type = #tpu.core_type<tc>, window_params = [{transform_indices = @transform_0, window_bounds = array<i64: 1, 8, 32>}, {pipeline_mode = #tpu.pipeline_mode<synchronous>, transform_indices = @transform_1, window_bounds = array<i64: 1, 32>}, {pipeline_mode = #tpu.pipeline_mode<synchronous>, transform_indices = @transform_2, window_bounds = array<i64: 1, 32>}, {pipeline_mode = #tpu.pipeline_mode<synchronous>, transform_indices = @transform_3, window_bounds = array<i64: 32, 96>}, {transform_indices = @transform_4, window_bounds = array<i64: 1, 8, 32>}, {transform_indices = @transform_5, window_bounds = array<i64: 1, 8, 96>}]} {
    %c0 = arith.constant 0 : index
    %c0_0 = arith.constant 0 : index
    %c0_1 = arith.constant 0 : index
    %0 = vector.load %arg2[%c0, %c0_0, %c0_1] : memref<1x8x32xf32, #tpu.memory_space<vmem>>, vector<1x8x32xf32>
    %1 = vector.shape_cast %0 : vector<1x8x32xf32> to vector<8x32xf32>
    %c0_2 = arith.constant 0 : index
    %c0_3 = arith.constant 0 : index
    %2 = vector.load %arg3[%c0_2, %c0_3] : memref<1x32xf32, #tpu.memory_space<vmem>>, vector<1x32xf32>
    %c0_4 = arith.constant 0 : index
    %c0_5 = arith.constant 0 : index
    %3 = vector.load %arg4[%c0_4, %c0_5] : memref<1x32xf32, #tpu.memory_space<vmem>>, vector<1x32xf32>
    %cst = arith.constant dense<0.000000e+00> : vector<8xf32>
    %4 = vector.multi_reduction <add>, %1, %cst [1] : vector<8x32xf32> to vector<8xf32>
    %5 = vector.shape_cast %4 : vector<8xf32> to vector<8x1xf32>
    %cst_6 = arith.constant 3.200000e+01 : f32
    %6 = vector.broadcast %cst_6 : f32 to vector<8x1xf32>
    %7 = arith.divf %5, %6 : vector<8x1xf32>
    %8 = vector.broadcast %7 : vector<8x1xf32> to vector<8x32xf32>
    %9 = arith.subf %1, %8 : vector<8x32xf32>
    %10 = arith.mulf %9, %9 : vector<8x32xf32>
    %cst_7 = arith.constant dense<0.000000e+00> : vector<8xf32>
    %11 = vector.multi_reduction <add>, %10, %cst_7 [1] : vector<8x32xf32> to vector<8xf32>
    %12 = vector.shape_cast %11 : vector<8xf32> to vector<8x1xf32>
    %cst_8 = arith.constant 3.200000e+01 : f32
    %13 = vector.broadcast %cst_8 : f32 to vector<8x1xf32>
    %14 = arith.divf %12, %13 : vector<8x1xf32>
    %15 = vector.broadcast %7 : vector<8x1xf32> to vector<8x32xf32>
    %16 = arith.subf %1, %15 : vector<8x32xf32>
    %cst_9 = arith.constant 9.99999974E-6 : f32
    %17 = vector.broadcast %cst_9 : f32 to vector<8x1xf32>
    %18 = arith.addf %14, %17 : vector<8x1xf32>
    %19 = math.rsqrt %18 : vector<8x1xf32>
    %20 = vector.broadcast %19 : vector<8x1xf32> to vector<8x32xf32>
    %21 = arith.mulf %16, %20 : vector<8x32xf32>
    %22 = vector.broadcast %2 : vector<1x32xf32> to vector<8x32xf32>
    %23 = arith.mulf %21, %22 : vector<8x32xf32>
    %24 = vector.broadcast %3 : vector<1x32xf32> to vector<8x32xf32>
    %25 = arith.addf %23, %24 : vector<8x32xf32>
    %c0_10 = arith.constant 0 : index
    %c0_11 = arith.constant 0 : index
    %c0_12 = arith.constant 0 : index
    %26 = vector.load %arg6[%c0_10, %c0_11, %c0_12] : memref<1x8x32xf32, #tpu.memory_space<vmem>>, vector<1x8x32xf32>
    %27 = vector.shape_cast %26 : vector<1x8x32xf32> to vector<8x32xf32>
    %28 = vector.shape_cast %25 : vector<8x32xf32> to vector<1x8x32xf32>
    tpu.vector_store %arg6[%c0_10, %c0_11, %c0_12], %28 {strides = array<i32>} : memref<1x8x32xf32, #tpu.memory_space<vmem>>, vector<1x8x32xf32>,
    %29 = arith.truncf %25 : vector<8x32xf32> to vector<8x32xbf16>
    %c0_13 = arith.constant 0 : index
    %c0_14 = arith.constant 0 : index
    %30 = vector.load %arg5[%c0_13, %c0_14] : memref<32x96xbf16, #tpu.memory_space<vmem>>, vector<32x96xbf16>
    %cst_15 = arith.constant dense<0.000000e+00> : vector<8x96xf32>
    %31 = tpu.matmul %29, %30, %cst_15 {dimension_numbers = #tpu.dot_dimension_numbers<[1], [0], [0], [1], [0, 0, 1, 1], [], []>} : vector<8x32xbf16>, vector<32x96xbf16>, vector<8x96xf32> -> vector<8x96xf32>
    %32 = arith.truncf %31 : vector<8x96xf32> to vector<8x96xbf16>
    %c0_16 = arith.constant 0 : index
    %c0_17 = arith.constant 0 : index
    %c0_18 = arith.constant 0 : index
    %33 = vector.load %arg7[%c0_16, %c0_17, %c0_18] : memref<1x8x96xbf16, #tpu.memory_space<vmem>>, vector<1x8x96xbf16>
    %34 = vector.shape_cast %33 : vector<1x8x96xbf16> to vector<8x96xbf16>
    %35 = vector.shape_cast %32 : vector<8x96xbf16> to vector<1x8x96xbf16>
    tpu.vector_store %arg7[%c0_16, %c0_17, %c0_18], %35 {strides = array<i32>} : memref<1x8x96xbf16, #tpu.memory_space<vmem>>, vector<1x8x96xbf16>,
    return
  }
  func.func @transform_0(%arg0: i32, %arg1: i32) -> (i32, i32, i32) {
    %c0_i32 = arith.constant 0 : i32
    %c0_i32_0 = arith.constant 0 : i32
    return %arg0, %arg1, %c0_i32 : i32, i32, i32
  }
  func.func @transform_1(%arg0: i32, %arg1: i32) -> (i32, i32) {
    %c0_i32 = arith.constant 0 : i32
    %c0_i32_0 = arith.constant 0 : i32
    %c0_i32_1 = arith.constant 0 : i32
    return %c0_i32, %c0_i32_0 : i32, i32
  }
  func.func @transform_2(%arg0: i32, %arg1: i32) -> (i32, i32) {
    %c0_i32 = arith.constant 0 : i32
    %c0_i32_0 = arith.constant 0 : i32
    %c0_i32_1 = arith.constant 0 : i32
    return %c0_i32, %c0_i32_0 : i32, i32
  }
  func.func @transform_3(%arg0: i32, %arg1: i32) -> (i32, i32) {
    %c0_i32 = arith.constant 0 : i32
    %c0_i32_0 = arith.constant 0 : i32
    %c0_i32_1 = arith.constant 0 : i32
    return %c0_i32, %c0_i32_0 : i32, i32
  }
  func.func @transform_4(%arg0: i32, %arg1: i32) -> (i32, i32, i32) {
    %c0_i32 = arith.constant 0 : i32
    %c0_i32_0 = arith.constant 0 : i32
    return %arg0, %arg1, %c0_i32 : i32, i32, i32
  }
  func.func @transform_5(%arg0: i32, %arg1: i32) -> (i32, i32, i32) {
    %c0_i32 = arith.constant 0 : i32
    %c0_i32_0 = arith.constant 0 : i32
    return %arg0, %arg1, %c0_i32 : i32, i32, i32
  }
}

</mosaic_0001>

<bundles_post_ra>
// kernel: tpu_custom_call.1
= control target key start
LH: loop header
LB: loop body
LE: loop exit
PB: predicated region body
PF: predicated region fallthrough
CT: control target
= control target key end

     0   :  { %11 = vsyncpa [#allocation3], 0  ;;  %s1128_s0 = inlined_call_operand.hbm [shape: f32[2,8,32], index: 0, kind: input, shape index: {}]   ;;  %s1129_s1 = inlined_call_operand.vmem [shape: f32[1,32], index: 1, kind: input, shape index: {}]   ;;  %s1130_s2 = inlined_call_operand.vmem [shape: f32[1,32], index: 2, kind: input, shape index: {}]   ;;  %s1131_s3 = inlined_call_operand.hbm [shape: bf16[32,96], index: 3, kind: input, shape index: {}]   ;;  %s1132_s4 = inlined_call_operand.hbm [shape: f32[2,8,32], index: 4, kind: output, shape index: {0}]   ;;  %s1133_s5 = inlined_call_operand.hbm [shape: bf16[2,8,96], index: 5, kind: output, shape index: {1}]  }
   0x1   :  { %13 = vsyncpa [#allocation3 + $0x1], 0 }
   0x2   :  { %14 = vsyncpa [#allocation6], 0 }
   0x3   :  { %15 = vsyncpa [#allocation4], 0 }
   0x4   :  { %17 = vsyncpa [#allocation4 + $0x1], 0 }
   0x5   :  { %18 = vsyncpa [#allocation9], 0 }
   0x6   :  { %20 = vsyncpa [#allocation9 + $0x1], 0  ;;  %s875_s18 = smov 0   ;;  %s877_s19 = smov 0  }
   0x7   :  { %s879_s20 = smov 0   ;;  %s881_s21 = smov 0  }
   0x8   :  { %s883_s22 = smov 0   ;;  %s885_s23 = smov 0  }
   0x9 LB: > { %s539_s24 = sadd.s32 4294967295, %s835_s23   ;;  %s540_s25 = sadd.s32 4294967294, %s835_s23   ;;  %s835_s23 = sphi %s885_s23, %s26_s23   ;;  %s831_s22 = sphi %s883_s22, %s1157_s22   ;;  %s827_s21 = sphi %s881_s21, %s1156_s21   ;;  %s823_s20 = sphi %s879_s20, %s1155_s20   ;;  %s819_s19 = sphi %s877_s19, %s1154_s19   ;;  %s815_s18 = sphi %s875_s18, %s1153_s18  }
   0xa   : > { %p60_p0 = scmp.ne.s32.totalorder %s819_s19, %s815_s18  ;;  %p909_p1 = scmp.eq.s32.totalorder %s539_s24, 0 }
   0xb   : > { %p913_p2 = scmp.eq.s32.totalorder %s539_s24, 1  ;;  %p155_p3 = scmp.eq.s32.totalorder %s540_s25, 1 }
   0xc   : > { %s1138_s26 = scalar_select %p909_p1, 1, 0 }
   0xd   : > { %s1139_s27 = scalar_select %p913_p2, 1, 0 }
   0xe   : > { %p919_p4 = por %p909_p1, %p60_p0  ;;  %p541_p5 = scmp.ge.s32.totalorder %s835_s23, 1 }
   0xf   : > { %p924_p6 = por %p155_p3, %p60_p0  ;;  %p190_p7 = scmp.lt.s32.totalorder %s835_s23, 3 }
  0x10   : > { %s1140_s28 = scalar_select %p919_p4, 1, 0 }
  0x11   : > { %s1141_s29 = scalar_select %p924_p6, 1, 0 }
  0x12   : > { %p929_p8 = pnand %p541_p5, %p190_p7  ;;  %s837_s6 = smov [#allocation5]  }
  0x13   : > { %s208_s7 = sshll.u32 %s837_s6, 4  ;;  %s38_s9 = sadd.s32 1, %s831_s22  ;;  %s209_s7 = int_to_ptr.vmem [resolvable:$true] %s208_s7 }
  0x14   : > { %s1142_s30 = scalar_select %p929_p8, 1, 0 }
  0x15   : > { %p583_p9 = pneg %p929_p8  ;;  %s659_s12 = scalar_lea.hbm %s1131_s3, 256 }
  0x16   : > { %p660_p12 = scmp.ne.s32.totalorder %s1131_s3, %s659_s12  ;;  %p666_p5 = scmp.lt.u32.totalorder %s659_s12, %s1131_s3 }
  0x17   : > { %p938_p11 = pnand %p583_p9, %p909_p1 }
  0x19   : > { %p661_p13 = pneg %p938_p11 }
  0x1b   : > { %p662_p0 = pnand %p661_p13, %p660_p12 }
  0x1d   : > { %p663_p3 = pneg %p662_p0 }
  0x1f   : > { %p668_p7 = pnand %p666_p5, %p663_p3 }
  0x21   : > { %671 = shalt.err (!%p668_p7)
}
  0x22   : > { %s672_s17 = scalar_lea.vmem %s209_s7, 256  ;;  %p680_p1 = scmp.lt.s32.totalorder %s209_s7, %s209_s7 }
  0x23   : > { %p673_p9 = scmp.ne.s32.totalorder %s209_s7, %s672_s17  ;;  %p681_p4 = scmp.lt.s32.totalorder %s672_s17, %s672_s17 }
  0x25   : > { %p675_p10 = pnand %p673_p9, %p661_p13  ;;  %p682_p8 = por %p681_p4, %p680_p1 }
  0x27   : > { %p676_p6 = pneg %p675_p10 }
  0x29   : > { %p683_p2 = pnand %p682_p8, %p676_p6 }
  0x2b   : > { %686 = shalt.err (!%p683_p2)
}
  0x2c   : > { %s838_s24 = smov 64   ;;  %s839_s25 = smov 4  }
  0x2d   : > { %586 = dma.hbm_to_vmem [thread:$0]  (!%p938_p11), %s1131_s3, 256, %s209_s7, [#allocation6], %s838_s24, %s838_s24, %s839_s25  }
  0x2e   : > { %p40_p1 = scmp.ge.s32.totalorder %s38_s9, 2  ;;  %s47_s11 = sadd.s32 1, %s823_s20 }
  0x2f   : > { %p54_p2 = scmp.ne.s32.totalorder %s823_s20, %s819_s19  ;;  %p55_p4 = scmp.eq.s32.totalorder %s835_s23, 0 }
  0x30   : > { %s1159_s9 = smov (%p40_p1, %s38_s9), 0  ;;  %p1145_p8 = scmp.ne.s32.totalorder %s1139_s27, 0 }
  0x31   : > { %p965_p6 = por %p55_p4, %p54_p2  ;;  %s42_s8 = ssub.s32 %s831_s22, %s1159_s9 }
  0x32   : > { %p971_p10 = por %p1145_p8, %p54_p2  ;;  %p599_p12 = scmp.lt.s32.totalorder %s835_s23, 2 }
  0x33   : > { %p45_p11 = scmp.eq.s32.totalorder %s42_s8, 0  ;;  %s222_s7 = sand.u32 1, %s823_s20  }
  0x34   : > { %s544_s14 = sshll.u32 %s222_s7, 3  ;;  %s545_s16 = sshll.u32 %s831_s22, 7 }
  0x35   : > { %s980_s15 = scalar_select %p45_p11, %s823_s20, %s47_s11  }
  0x36   : > { %s986_s25 = scalar_lea.hbm %s1128_s0, %s545_s16  ;;  %s226_s27 = scalar_lea.vmem [#allocation2], %s544_s14 }
  0x37   : > { %s234_s6 = sshll.u32 %s226_s27, 4  ;;  %p992_p13 = pnand %p599_p12, %p965_p6  ;;  %s988_s6 = int_to_ptr.vmem [resolvable:$true] %s234_s6 }
  0x38   : > { %s223_s11 = scalar_lea.sflag [#allocation3], %s222_s7  ;;  %s687_s8 = scalar_lea.hbm %s986_s25, 128 }
  0x39   : > { %p688_p0 = scmp.ne.s32.totalorder %s986_s25, %s687_s8  ;;  %p689_p3 = pneg %p992_p13 }
  0x3a   : > { %s692_s17 = scalar_lea.hbm %s1128_s0, 256  ;;  %p693_p9 = scmp.lt.u32.totalorder %s986_s25, %s1128_s0 }
  0x3b   : > { %p690_p5 = pnand %p689_p3, %p688_p0  ;;  %p694_p1 = scmp.lt.u32.totalorder %s692_s17, %s687_s8 }
  0x3c   : > { %p696_p4 = scmp.lt.u32.totalorder %s687_s8, %s986_s25 }
  0x3d   : > { %p691_p7 = pneg %p690_p5  ;;  %p695_p2 = por %p694_p1, %p693_p9 }
  0x3f   : > { %p697_p6 = por %p696_p4, %p695_p2 }
  0x41   : > { %p698_p8 = pnand %p697_p6, %p691_p7 }
  0x43   : > { %701 = shalt.err (!%p698_p8)
}
  0x44   : > { %s702_s7 = scalar_lea.vmem %s988_s6, 128  ;;  %s840_s27 = smov [#allocation2]  }
  0x45   : > { %p703_p12 = scmp.ne.s32.totalorder %s988_s6, %s702_s7  ;;  %s707_s14 = sshll.u32 %s840_s27, 4  ;;  %s708_s14 = int_to_ptr.vmem [resolvable:$false] %s707_s14 }
  0x46   : > { %s709_s16 = scalar_lea.vmem %s708_s14, 256  ;;  %p710_p5 = scmp.lt.s32.totalorder %s988_s6, %s708_s14 }
  0x47   : > { %p705_p11 = pnand %p703_p12, %p689_p3  ;;  %p711_p9 = scmp.lt.s32.totalorder %s709_s16, %s702_s7 }
  0x49   : > { %p706_p0 = pneg %p705_p11  ;;  %p712_p1 = por %p711_p9, %p710_p5 }
  0x4b   : > { %p713_p2 = pnand %p712_p1, %p706_p0 }
  0x4d   : > { %716 = shalt.err (!%p713_p2)
}
  0x4e   : > { %590 = dma.hbm_to_vmem [thread:$0]  (!%p992_p13), %s986_s25, 128, %s988_s6, %s223_s11  }
  0x4f   : > { %p1148_p7 = scmp.ne.s32.totalorder %s1142_s30, 0 }
  0x50   : > { %s1024_s8 = sand.u32 (!%p1148_p7), 1, %s819_s19   ;;  %p1149_p3 = scmp.ne.s32.totalorder (!%p1148_p7), %s1140_s28, 0 }
  0x51   : > { %243 = sbr.rel (%p1148_p7) target bundleno = 636 (0x27c), region = 36  ;;  %s547_s17 = sshll.u32 (!%p1148_p7), %s1024_s8, 3 }
  0x52   : > { %s246_s12 = scalar_lea.sflag (!%p1148_p7), [#allocation3], %s1024_s8  ;;  %s249_s24 = scalar_lea.vmem (!%p1148_p7), [#allocation2], %s547_s17 }
  0x58   : > { %798 = dma.done.wait (%p1149_p3), %s246_s12, 128  }
  0x59   : > { %800 = vsyncadd (%p1149_p3), %s246_s12, 4294967168  ;;  %p1150_p13 = scmp.ne.s32.totalorder %s1138_s26, 0 }
  0x5b   : > { %802 = dma.done.wait (%p1150_p13), [#allocation6], 256  }
  0x5c   : > { %804 = vsyncadd (%p1150_p13), [#allocation6], 4294967040  ;;  %vm289_vm0 = vcmask 261120   ;;  %v286_v0 = vld [vmem:[%s249_s24] sm:$0xff]  ;;  %v655_v7 = vld [vmem:[#allocation5] sm:$0xff]   ;;  %v841_v8 = vmov 0.0  }
  0x5d   : > { %v290_v1 = vsel %vm289_vm0, %v286_v0, 0.0  ;;  %565 = vmatprep.subr.bf16.mxu0 %v841_v8  ;;  %v656_v9 = vld [vmem:[#allocation5 + $0x8] sm:$0xff]   ;;  %vm842_vm1 = vmmov 0   ;;  %v551_v14 = vld [vmem:[%s1129_s1] ss:$0 sm:$0xff]  ;;  %s277_s6 = scalar_lea.vmem [#allocation7], %s547_s17 }
  0x5e   : > { %291 = vadd.xlane.f32.xlu0 %v290_v1  ;;  %566 = vmatpush3.bf16.msra.mxu0 %v655_v7  ;;  %v552_v16 = vld [vmem:[%s1130_s2] ss:$0 sm:$0xff]  ;;  %s558_s10 = sshll.u32 %s827_s21, 7  ;;  %s402_s11 = sshll.u32 %s277_s6, 4  ;;  %s403_s11 = int_to_ptr.vmem [resolvable:$true] %s402_s11 }
  0x5f   : > { %569 = vmatprep.mubr.msk.bf16.mxu0 %vm842_vm1, %v841_v8  ;;  %567 = vmatprep.subr.bf16.mxu0 %v841_v8  ;;  %s1054_s14 = scalar_lea.hbm %s1132_s4, %s558_s10  ;;  %s383_s16 = scalar_lea.sflag [#allocation4], %s1024_s8 }
  0x60   : > { %s717_s12 = scalar_lea.vmem %s403_s11, 128  ;;  %s843_s24 = smov [#allocation7]  }
  0x61   : > { %p718_p4 = scmp.ne.s32.totalorder %s403_s11, %s717_s12  ;;  %s721_s17 = sshll.u32 %s843_s24, 4  ;;  %s722_s17 = int_to_ptr.vmem [resolvable:$false] %s721_s17 }
  0x62   : > { %568 = vmatpush3.bf16.msra.mxu0 %v656_v9  ;;  %s723_s26 = scalar_lea.vmem %s722_s17, 256  ;;  %p724_p12 = scmp.lt.s32.totalorder %s403_s11, %s722_s17 }
  0x63   : > { %p719_p6 = pnand %p718_p4, %p971_p10  ;;  %p725_p11 = scmp.lt.s32.totalorder %s723_s26, %s717_s12 }
  0x65   : > { %p720_p8 = pneg %p719_p6  ;;  %p726_p0 = por %p725_p11, %p724_p12 }
  0x67   : > { %p727_p5 = pnand %p726_p0, %p720_p8 }
  0xeb   : > { %v292_v2 = vpop.xlane.xlu0 %291 }
  0xec   : > { %v294_v3 = vmul.f32 0.03125, %v292_v2 }
  0xee   : > { %v295_v4 = vsub.f32 %v286_v0, %v294_v3 }
  0xf0   : > { %v296_v5 = vmul.f32 %v295_v4, %v295_v4 }
  0xf2   : > { %v297_v6 = vsel %vm289_vm0, %v296_v5, 0.0 }
  0xf3   : > { %298 = vadd.xlane.f32.xlu0 %v297_v6 }
 0x180   : > { %v299_v10 = vpop.xlane.xlu0 %298 }
 0x181   : > { %v300_v11 = vmul.f32 0.03125, %v299_v10 }
 0x183   : > { %v301_v12 = vadd.f32 1e-05, %v300_v11 }
 0x185   : > { %657 = vrsqrt.f32 %v301_v12 }
 0x18f   : > { %v658_v13 = vpop.eup %657 }
 0x190   : > { %v303_v15 = vmul.f32 %v658_v13, %v295_v4 }
 0x192   : > { %v310_v17 = vmul.f32 %v551_v14, %v303_v15 }
 0x194   : > { %v317_v18 = vadd.f32 %v552_v16, %v310_v17 }
 0x196   : > { %v319_v19 = vpack.c.bf16 %v317_v18, %v317_v18  ;;  %318 = vst.msk [vmem:[%s277_s6] sm:$0xff] %vm289_vm0, %v317_v18 }
 0x198   : > { %570 = vmatmul.mubr.msk.bf16.vlgmr.msra.gmra.mrb[0].mxu0 %vm289_vm0, %v319_v19 }
 0x199   : > { %730 = shalt.err (!%p727_p5)
}
 0x19a   : > { %s731_s28 = scalar_lea.hbm %s1054_s14, 128  ;;  %s735_s6 = scalar_lea.hbm %s1132_s4, 256 }
 0x19b   : > { %p732_p9 = scmp.ne.s32.totalorder %s1054_s14, %s731_s28  ;;  %p736_p7 = scmp.lt.u32.totalorder %s1054_s14, %s1132_s4 }
 0x19c   : > { %p737_p3 = scmp.lt.u32.totalorder %s735_s6, %s731_s28  ;;  %p739_p4 = scmp.lt.u32.totalorder %s731_s28, %s1054_s14 }
 0x19d   : > { %p733_p1 = pnand %p732_p9, %p971_p10 }
 0x19e   : > { %p738_p13 = por %p737_p3, %p736_p7 }
 0x19f   : > { %p734_p2 = pneg %p733_p1 }
 0x1a0   : > { %p740_p6 = por %p739_p4, %p738_p13 }
 0x1a2   : > { %p741_p8 = pnand %p740_p6, %p734_p2 }
 0x1a4   : > { %744 = shalt.err (!%p741_p8)
}
 0x1a5   : > { %579 = dma.vmem_to_hbm [thread:$0]  (%p971_p10), %s403_s11, 128, %s1054_s14, %s383_s16   ;;  %vm380_vm2 = vcmask 781312  }
 0x1a6   : > { %s550_s27 = sshll.u32 %s1024_s8, 2  ;;  %s559_s12 = sshll.u32 %s827_s21, 6 }
 0x1a7   : > { %s284_s24 = scalar_lea.vmem [#allocation8], %s550_s27  ;;  %s1079_s30 = scalar_lea.hbm %s1133_s5, %s559_s12 }
 0x1a8   : > { %s416_s17 = sshll.u32 %s284_s24, 4  ;;  %s388_s21 = scalar_lea.sflag [#allocation9], %s1024_s8  ;;  %s1081_s17 = int_to_ptr.vmem [resolvable:$true] %s416_s17 }
 0x1a9   : > { %s745_s11 = scalar_lea.vmem %s1081_s17, 64  ;;  %s844_s14 = smov [#allocation8]  }
 0x1aa   : > { %p746_p12 = scmp.ne.s32.totalorder %s1081_s17, %s745_s11  ;;  %s749_s16 = sshll.u32 %s844_s14, 4  ;;  %s750_s16 = int_to_ptr.vmem [resolvable:$false] %s749_s16 }
 0x1ab   : > { %s751_s25 = scalar_lea.vmem %s750_s16, 128  ;;  %p752_p5 = scmp.lt.s32.totalorder %s1081_s17, %s750_s16 }
 0x1ac   : > { %p747_p11 = pnand %p746_p12, %p971_p10  ;;  %p753_p9 = scmp.lt.s32.totalorder %s751_s25, %s745_s11 }
 0x1ae   : > { %p748_p0 = pneg %p747_p11  ;;  %p754_p1 = por %p753_p9, %p752_p5 }
 0x1b0   : > { %p755_p2 = pnand %p754_p1, %p748_p0 }
 0x26b   : > { %v373_v20 = vpop.f32.mrb[0].mxu0 }
 0x26c   : > { %v379_v21 = vpack.c.bf16 %v373_v20, %v373_v20  ;;  %v571_v22 = vpop.f32.mrb[1].mxu0 }
 0x26d   : > { %v376_v23 = vpop.f32.mrb[2].mxu0 }
 0x26e   : > { %v572_v24 = vpop.f32.mrb[3].mxu0  ;;  %381 = vst.msk [vmem:[%s284_s24] sm:$0xf] %vm380_vm2, %v379_v21 }
 0x26f   : > { %758 = shalt.err (!%p755_p2)
}
 0x270   : > { %s759_s8 = scalar_lea.hbm %s1079_s30, 64  ;;  %s763_s7 = scalar_lea.hbm %s1133_s5, 128 }
 0x271   : > { %p760_p7 = scmp.ne.s32.totalorder %s1079_s30, %s759_s8  ;;  %p764_p4 = scmp.lt.u32.totalorder %s1079_s30, %s1133_s5 }
 0x272   : > { %p765_p6 = scmp.lt.u32.totalorder %s763_s7, %s759_s8  ;;  %p767_p12 = scmp.lt.u32.totalorder %s759_s8, %s1079_s30 }
 0x273   : > { %p761_p3 = pnand %p760_p7, %p971_p10 }
 0x274   : > { %p766_p8 = por %p765_p6, %p764_p4 }
 0x275   : > { %p762_p13 = pneg %p761_p3 }
 0x276   : > { %p768_p11 = por %p767_p12, %p766_p8 }
 0x278   : > { %p769_p0 = pnand %p768_p11, %p762_p13 }
 0x27a   : > { %772 = shalt.err (!%p769_p0)
}
 0x27b   : > { %580 = dma.vmem_to_hbm [thread:$0]  (%p971_p10), %s1081_s17, 64, %s1079_s30, %s388_s21  }
 0x27c PF: > { %s428_s24 = sand.u32 1, %s815_s18   ;;  %p1151_p5 = scmp.ne.s32.totalorder %s1141_s29, 0 }
 0x27d   : > { %p1152_p9 = scmp.ge.s32.totalorder %s835_s23, 2  ;;  %s429_s26 = scalar_lea.sflag [#allocation4], %s428_s24 }
 0x27f   : > { %p592_p1 = pnand %p1152_p9, %p1151_p5 }
 0x281   : > { %806 = dma.done.wait (!%p592_p1), %s429_s26, 128  }
 0x282   : > { %808 = vsyncadd (!%p592_p1), %s429_s26, 4294967168  ;;  %s438_s28 = scalar_lea.sflag [#allocation9], %s428_s24 }
 0x283   : > { %810 = dma.done.wait (!%p592_p1), %s438_s28, 64  }
 0x284   : > { %812 = vsyncadd (!%p592_p1), %s438_s28, 4294967232  ;;  %s26_s23 = sadd.s32 1, %s835_s23   ;;  %s1153_s18 = smov %s819_s19 }
 0x285   : > { %p23_p2 = scmp.ge.s32.totalorder %s26_s23, 4   ;;  %s1154_s19 = smov %s823_s20 }
 0x286   : > { %s1155_s20 = smov %s980_s15  ;;  %s1156_s21 = smov %s831_s22 }
 0x287   : > { %s1157_s22 = smov %s1159_s9  ;;  %25 = sbr.rel (!%p23_p2) target bundleno = 9 (0x9), region = 102 }
 0x28e   :  { %443 = vsyncpa [#allocation3], 1 }
 0x28f   :  { %445 = vsyncpa [#allocation3 + $0x1], 1 }
 0x290   :  { %446 = vsyncpa [#allocation6], 1 }
 0x291   :  { %447 = vsyncpa [#allocation4], 1 }
 0x292   :  { %449 = vsyncpa [#allocation4 + $0x1], 1 }
 0x293   :  { %450 = vsyncpa [#allocation9], 1 }
 0x294   :  { %452 = vsyncpa [#allocation9 + $0x1], 1 }

</bundles_post_ra>
